<compile_context>
chip_gen: v6e
topology: v6e:2x2x1
jax: 0.10.0
libtpu: 0.0.40
codegen_flags: <defaults>
</compile_context>

<pallas_src>
import jax
import jax.numpy as jnp
from jax import lax
from jax.experimental import pallas as pl
from jax.experimental.pallas import tpu as pltpu

BN_EPS = 1e-5                       # PyTorch BatchNorm2d default
VMEM_LIMIT = 48 * 1024 * 1024       # safe on v5e/v6e (128 MiB) and v7x (64 MiB)


# ---------------------------------------------------------------------------
# Small helpers
# ---------------------------------------------------------------------------
def _round_up(x, m):
    return ((x + m - 1) // m) * m


def _cparams(*sem, vmem=None):
    kw = {}
    if vmem is not None:
        kw["vmem_limit_bytes"] = vmem
    return pltpu.CompilerParams(dimension_semantics=tuple(sem), **kw)


def _m_tiling(M, max_tile=512):
    """(padded_M, tile): tile | padded_M, tile % 16 == 0 (bf16 sublane packing)."""
    Mp = _round_up(M, 16)
    if Mp <= max_tile:
        return Mp, Mp
    for t in (512, 256, 128, 64, 32, 16):
        Mpt = _round_up(M, t)
        if Mpt - M <= max(M // 8, 16):       # keep pad waste small
            return Mpt, t
    return Mp, 16


def _k_tiling(K):
    """Contraction tiling: prefer tk in {512, 256} (2x256x256 MXU alignment)."""
    Kp = _round_up(K, 128)
    if Kp <= 512:
        return Kp, Kp
    Kp = _round_up(K, 256)
    if Kp % 512 == 0:
        return Kp, 512
    return Kp, 256


def _n_tiling(Cs):
    for tn in (512, 256, 128):
        if Cs % tn == 0:
            return tn
    return Cs


def _div_tile(n, candidates=(1024, 512, 256, 128, 64, 32, 16)):
    for c in candidates:
        if c <= n and n % c == 0:
            return c
    return n


# ---------------------------------------------------------------------------
# Pallas kernels
# ---------------------------------------------------------------------------
def _make_mm_kernel(fused, m_valid, tm, m_axis, mask_rows):
    """Tiled bf16 matmul, f32 accumulation, BN-stats epilogue.

    If `fused`, the A tile is first normalized (a*scale+shift, ReLU) -- this is
    BN pass 2 of the *previous* conv folded into this conv's A-load prologue.
    Padded M rows are masked to zero so they don't pollute this conv's stats.
    """
    def epilogue(acc_ref, y_ref, st_ref):
        y = acc_ref[...]
        y_ref[...] = y.astype(y_ref.dtype)
        s1 = jnp.sum(y, axis=0, keepdims=True)          # (1, tn) column sums
        s2 = jnp.sum(y * y, axis=0, keepdims=True)      # (1, tn) column sumsq
        st_ref[...] = jnp.concatenate([s1, s2], axis=0)[None]   # (1, 2, tn)

    if fused:
        def kernel(a_ref, asc_ref, ash_ref, w_ref, y_ref, st_ref, acc_ref):
            k = pl.program_id(2)

            @pl.when(k == 0)
            def _():
                acc_ref[...] = jnp.zeros_like(acc_ref)

            a = a_ref[...].astype(jnp.float32) * asc_ref[...] + ash_ref[...]
            a = jnp.maximum(a, 0.0)
            if mask_rows:
                row = (pl.program_id(m_axis) * tm
                       + lax.broadcasted_iota(jnp.int32, (tm, 1), 0))
                a = jnp.where(row < m_valid, a, 0.0)
            acc_ref[...] += jnp.dot(a.astype(jnp.bfloat16), w_ref[...],
                                    preferred_element_type=jnp.float32)

            @pl.when(k == pl.num_programs(2) - 1)
            def _():
                epilogue(acc_ref, y_ref, st_ref)
    else:
        def kernel(a_ref, w_ref, y_ref, st_ref, acc_ref):
            k = pl.program_id(2)

            @pl.when(k == 0)
            def _():
                acc_ref[...] = jnp.zeros_like(acc_ref)

            acc_ref[...] += jnp.dot(a_ref[...], w_ref[...],
                                    preferred_element_type=jnp.float32)

            @pl.when(k == pl.num_programs(2) - 1)
            def _():
                epilogue(acc_ref, y_ref, st_ref)

    return kernel


def _make_norm_kernel(apply_relu, has_residual):
    """BN pass 2: y*scale+shift (+ residual*r_scale+r_shift) (+ ReLU), bf16 store."""
    if has_residual:
        def kernel(y_ref, sc_ref, sh_ref, r_ref, rsc_ref, rsh_ref, o_ref):
            z = y_ref[...].astype(jnp.float32) * sc_ref[...] + sh_ref[...]
            z = z + (r_ref[...].astype(jnp.float32) * rsc_ref[...] + rsh_ref[...])
            if apply_relu:
                z = jnp.maximum(z, 0.0)
            o_ref[...] = z.astype(o_ref.dtype)
    else:
        def kernel(y_ref, sc_ref, sh_ref, o_ref):
            z = y_ref[...].astype(jnp.float32) * sc_ref[...] + sh_ref[...]
            if apply_relu:
                z = jnp.maximum(z, 0.0)
            o_ref[...] = z.astype(o_ref.dtype)
    return kernel


def _maxpool_kernel(p_ref, o_ref):
    # p_ref: (k*k, tm, C) window taps; reduce max over the tap axis.
    z = p_ref[0]
    for t in range(1, p_ref.shape[0]):
        z = jnp.maximum(z, p_ref[t])
    o_ref[...] = z


def _head_kernel(x_ref, w_ref, b_ref, o_ref):
    # Global average pool over spatial positions, then Linear (bf16 MXU, f32 acc).
    pooled = jnp.mean(x_ref[...].astype(jnp.float32), axis=1)        # (nb, C)
    o_ref[...] = jnp.dot(pooled.astype(jnp.bfloat16), w_ref[...],
                         preferred_element_type=jnp.float32) + b_ref[...]


# ---------------------------------------------------------------------------
# Pallas wrappers
# ---------------------------------------------------------------------------
def conv_raw_pallas(a, wmat, M, prologue=None):
    """A (Ma>=M, K) bf16 @ W (K, Cs) bf16 -> raw y (Mp, Cs) bf16 + BN stats.

    `prologue=(scale_K, shift_K)` applies the previous conv's BN+ReLU to the A
    tiles inside the kernel (padded M rows are masked to zero)."""
    Ma, K = a.shape
    Kw, Cs = wmat.shape
    assert K == Kw and Cs % 128 == 0 and Ma >= M

    Mp, tm = _m_tiling(M)
    Kp, tk = _k_tiling(K)
    tn = _n_tiling(Cs)
    nm = Mp // tm

    # Weight-stationary for weight-dominated (small-M, late-stage) convs:
    # Cout tiles outermost + whole-K tile -> each weight panel is DMA'd once.
    w_stationary = (Cs >= M) and (Kp <= 4096)
    if w_stationary:
        tk = Kp

    # Keep >= 2 output-column tiles when possible so both v7x TCs get work.
    if nm == 1 and Cs // tn == 1 and Cs >= 256 and (Cs // 2) % 128 == 0:
        tn = Cs // 2

    if Ma < Mp:
        a = jnp.pad(a, ((0, Mp - Ma), (0, 0)))
    elif Ma > Mp:
        a = a[:Mp]
    if Kp != K:
        a = jnp.pad(a, ((0, 0), (0, Kp - K)))
        wmat = jnp.pad(wmat, ((0, Kp - K), (0, 0)))

    nn, nk = Cs // tn, Kp // tk

    fused = prologue is not None
    if w_stationary:
        grid = (nn, nm, nk)
        m_axis = 1
        a_map = lambda j, i, k: (i, k)
        w_map = lambda j, i, k: (k, j)
        y_map = lambda j, i, k: (i, j)
        s_map = lambda j, i, k: (i, 0, j)
        p_map = lambda j, i, k: (0, k)
    else:
        grid = (nm, nn, nk)
        m_axis = 0
        a_map = lambda i, j, k: (i, k)
        w_map = lambda i, j, k: (k, j)
        y_map = lambda i, j, k: (i, j)
        s_map = lambda i, j, k: (i, 0, j)
        p_map = lambda i, j, k: (0, k)

    args = [a]
    in_specs = [pl.BlockSpec((tm, tk), a_map)]
    if fused:
        a_scale, a_shift = prologue
        a_scale = a_scale.reshape(1, -1).astype(jnp.float32)
        a_shift = a_shift.reshape(1, -1).astype(jnp.float32)
        if Kp != K:
            a_scale = jnp.pad(a_scale, ((0, 0), (0, Kp - K)))
            a_shift = jnp.pad(a_shift, ((0, 0), (0, Kp - K)))
        args += [a_scale, a_shift]
        in_specs += [pl.BlockSpec((1, tk), p_map), pl.BlockSpec((1, tk), p_map)]
    args.append(wmat)
    in_specs.append(pl.BlockSpec((tk, tn), w_map))

    y, stats = pl.pallas_call(
        _make_mm_kernel(fused, M, tm, m_axis, mask_rows=(Mp != M)),
        grid=grid,
        in_specs=in_specs,
        out_specs=[pl.BlockSpec((tm, tn), y_map),
                   pl.BlockSpec((1, 2, tn), s_map)],
        out_shape=[jax.ShapeDtypeStruct((Mp, Cs), jnp.bfloat16),
                   jax.ShapeDtypeStruct((nm, 2, Cs), jnp.float32)],
        scratch_shapes=[pltpu.VMEM((tm, tn), jnp.float32)],
        compiler_params=_cparams("parallel", "parallel", "arbitrary",
                                 vmem=VMEM_LIMIT),
    )(*args)

    col_sum = jnp.sum(stats[:, 0, :], axis=0)
    col_sq = jnp.sum(stats[:, 1, :], axis=0)
    return y, col_sum, col_sq


def conv_bn(a2d, cp, M, prologue=None):
    """Conv matmul + fold training-mode BN batch stats into (scale, shift)."""
    y, col_sum, col_sq = conv_raw_pallas(a2d, cp["wmat"], M, prologue=prologue)
    # Padded M rows / padded channels contribute exact zeros; divide by true M.
    mean = col_sum / M
    # TODO(synk): switch to a shifted sum-of-squares for better cancellation
    #             robustness when |mean| >> std in very deep nets.
    var = jnp.maximum(col_sq / M - mean * mean, 0.0)
    scale = cp["gamma"] * lax.rsqrt(var + BN_EPS)
    shift = cp["beta"] - mean * scale
    return y, scale, shift


def norm_pallas(y, scale, shift, m_valid, relu=True,
                residual=None, r_scale=None, r_shift=None):
    """BN pass 2 (+ optional residual with its own BN affine) (+ ReLU)."""
    Mp, Cs = y.shape
    tn = Cs if Cs <= 1024 else 1024           # full-row tiles (HBM-bound kernel)
    tm = _div_tile(Mp)

    args = [y, scale.reshape(1, Cs), shift.reshape(1, Cs)]
    in_specs = [pl.BlockSpec((tm, tn), lambda i, j: (i, j)),
                pl.BlockSpec((1, tn), lambda i, j: (0, j)),
                pl.BlockSpec((1, tn), lambda i, j: (0, j))]
    if residual is not None:
        if residual.shape[0] != Mp:
            residual = jnp.pad(residual, ((0, Mp - residual.shape[0]), (0, 0)))
        if r_scale is None:
            r_scale = jnp.ones((Cs,), jnp.float32)
            r_shift = jnp.zeros((Cs,), jnp.float32)
        args += [residual, r_scale.reshape(1, Cs), r_shift.reshape(1, Cs)]
        in_specs += [pl.BlockSpec((tm, tn), lambda i, j: (i, j)),
                     pl.BlockSpec((1, tn), lambda i, j: (0, j)),
                     pl.BlockSpec((1, tn), lambda i, j: (0, j))]

    out = pl.pallas_call(
        _make_norm_kernel(relu, residual is not None),
        grid=(Mp // tm, Cs // tn),
        in_specs=in_specs,
        out_specs=pl.BlockSpec((tm, tn), lambda i, j: (i, j)),
        out_shape=jax.ShapeDtypeStruct((Mp, Cs), jnp.bfloat16),
        compiler_params=_cparams("parallel", "parallel", vmem=VMEM_LIMIT),
    )(*args)
    return out[:m_valid]


def maxpool_pallas(x, k=3, stride=3, pad=1):
    """MaxPool2d(kernel=3, stride=3, padding=1) per the reference module."""
    N, H, W, C = x.shape
    Ho = (H + 2 * pad - k) // stride + 1
    Wo = (W + 2 * pad - k) // stride + 1
    xp = jnp.pad(x, ((0, 0), (pad, pad), (pad, pad), (0, 0)),
                 constant_values=-jnp.inf)
    M = N * Ho * Wo
    taps = []
    for i in range(k):
        for j in range(k):
            taps.append(
                xp[:, i:i + stride * Ho:stride, j:j + stride * Wo:stride, :]
                .reshape(M, C))
    p = jnp.stack(taps, axis=0)               # (k*k, M, C)

    Mp, tm = _m_tiling(M)
    if Mp != M:
        p = jnp.pad(p, ((0, 0), (0, Mp - M), (0, 0)))

    out = pl.pallas_call(
        _maxpool_kernel,
        grid=(Mp // tm,),
        in_specs=[pl.BlockSpec((k * k, tm, C), lambda i: (0, i, 0))],
        out_specs=pl.BlockSpec((tm, C), lambda i: (i, 0)),
        out_shape=jax.ShapeDtypeStruct((Mp, C), x.dtype),
        compiler_params=_cparams("parallel"),
    )(p)
    return out[:M].reshape(N, Ho, Wo, C)


def head_pallas(x_nhwc, fc_wmat, fc_b):
    N, H, W, C = x_nhwc.shape
    ncp = fc_wmat.shape[1]
    HW = H * W
    x = x_nhwc.reshape(N, HW, C)
    nb = N if N <= 8 else 8
    Np = _round_up(N, nb)
    if Np != N:
        x = jnp.pad(x, ((0, Np - N), (0, 0), (0, 0)))
    out = pl.pallas_call(
        _head_kernel,
        grid=(Np // nb,),
        in_specs=[pl.BlockSpec((nb, HW, C), lambda i: (i, 0, 0)),
                  pl.BlockSpec((C, ncp), lambda i: (0, 0)),
                  pl.BlockSpec((1, ncp), lambda i: (0, 0))],
        out_specs=pl.BlockSpec((nb, ncp), lambda i: (i, 0)),
        out_shape=jax.ShapeDtypeStruct((Np, ncp), jnp.float32),
        compiler_params=_cparams("parallel"),
    )(x, fc_wmat, fc_b)
    return out[:N]


# ---------------------------------------------------------------------------
# Glue: im2col (NHWC, bf16)
# ---------------------------------------------------------------------------
def _im2col(x, kh, kw, stride, pad):
    N, H, W, C = x.shape
    Ho = (H + 2 * pad - kh) // stride + 1
    Wo = (W + 2 * pad - kw) // stride + 1
    xp = jnp.pad(x, ((0, 0), (pad, pad), (pad, pad), (0, 0)))
    taps = []
    for i in range(kh):
        for j in range(kw):
            taps.append(xp[:, i:i + stride * Ho:stride, j:j + stride * Wo:stride, :])
    p = jnp.stack(taps, axis=3)                        # (N, Ho, Wo, kh*kw, C)
    return p.reshape(N * Ho * Wo, kh * kw * C), Ho, Wo    # K order = (tap, Cin)


# ---------------------------------------------------------------------------
# Parameter construction (deterministic, synthetic; channels padded to 128)
# ---------------------------------------------------------------------------
def _conv_bn_params(key, kh, kw, cin, cout, cin_store):
    cout_store = _round_up(cout, 128)
    fan_in = cin * kh * kw
    scale = 1.0 / float(fan_in) ** 0.5
    w = jax.random.uniform(key, (kh, kw, cin, cout), jnp.float32, -scale, scale)
    wfull = jnp.zeros((kh, kw, cin_store, cout_store), jnp.float32)
    wfull = wfull.at[:, :, :cin, :cout].set(w)
    # Conv bias omitted: exactly cancelled by training-mode BN mean subtraction.
    return {
        "kh": kh, "kw": kw,
        "wmat": wfull.reshape(kh * kw * cin_store, cout_store).astype(jnp.bfloat16),
        "gamma": jnp.zeros((cout_store,), jnp.float32).at[:cout].set(1.0),
        "beta": jnp.zeros((cout_store,), jnp.float32),
    }


def init_resnet_params(key, layers, img_ch, num_classes):
    keys = iter(jax.random.split(key, 256))
    params = {"stem": _conv_bn_params(next(keys), 7, 7, img_ch, 64, img_ch)}
    in_log, in_store = 64, _round_up(64, 128)
    all_layers = []
    for nb, out_ch, lstride in zip(layers, (64, 128, 256, 512), (1, 2, 2, 2)):
        blocks = []
        for bi in range(nb):
            s = lstride if bi == 0 else 1
            out_store = _round_up(out_ch, 128)
            blk = {
                "stride": s,
                "conv1": _conv_bn_params(next(keys), 1, 1, in_log, out_ch, in_store),
                "conv2": _conv_bn_params(next(keys), 3, 3, out_ch, out_ch, out_store),
                "conv3": _conv_bn_params(next(keys), 1, 1, out_ch, out_ch * 4, out_store),
            }
            if bi == 0 and (in_log != out_ch * 4 or s != 1):
                blk["down"] = _conv_bn_params(next(keys), 1, 1, in_log, out_ch * 4, in_store)
            blocks.append(blk)
            in_log = out_ch * 4
            in_store = _round_up(in_log, 128)
        all_layers.append(blocks)
    params["layers"] = all_layers

    k1, k2 = jax.random.split(next(keys))
    nc_store = _round_up(num_classes, 128)
    scale = 1.0 / float(512 * 4) ** 0.5
    fcw = jax.random.uniform(k1, (512 * 4, num_classes), jnp.float32, -scale, scale)
    fcb = jax.random.uniform(k2, (num_classes,), jnp.float32, -scale, scale)
    params["fc_wmat"] = (jnp.zeros((512 * 4, nc_store), jnp.float32)
                         .at[:, :num_classes].set(fcw)).astype(jnp.bfloat16)
    params["fc_b"] = jnp.zeros((1, nc_store), jnp.float32).at[0, :num_classes].set(fcb)
    params["num_classes"] = num_classes
    return params


# ---------------------------------------------------------------------------
# Forward pass (mirrors ResNet.forward / ResBlock.forward)
# ---------------------------------------------------------------------------
def resblock_forward(x4d, blk):
    N, H, W, Cin = x4d.shape
    s = blk["stride"]
    M0 = N * H * W
    x2d = x4d.reshape(M0, Cin)

    # conv1 (1x1) + bn1 + relu: pass 2 materialized (the 3x3 im2col needs it).
    # TODO(synk): fuse bn1+relu through the im2col via per-channel pad values.
    y1, sc1, sh1 = conv_bn(x2d, blk["conv1"], M0)
    a1 = norm_pallas(y1, sc1, sh1, M0, relu=True)
    a1_4d = a1.reshape(N, H, W, a1.shape[-1])

    # conv2 (3x3, stride s) + bn2: pass 2 is fused into conv3's A prologue.
    patches, Ho, Wo = _im2col(a1_4d, 3, 3, s, 1)
    M2 = N * Ho * Wo
    y2, sc2, sh2 = conv_bn(patches, blk["conv2"], M2)

    # conv3 (1x1): prologue applies bn2+relu to raw y2 tiles inside the matmul.
    y3, sc3, sh3 = conv_bn(y2, blk["conv3"], M2, prologue=(sc2, sh2))

    # Residual branch (downsample-path BN fused into the norm kernel's residual).
    if "down" in blk:
        xs = x4d[:, ::s, ::s, :] if s > 1 else x4d
        yd, scd, shd = conv_bn(xs.reshape(M2, Cin), blk["down"], M2)
        res, r_scale, r_shift = yd, scd, shd
    else:
        res, r_scale, r_shift = x2d, None, None       # identity: M0 == M2

    out = norm_pallas(y3, sc3, sh3, M2, relu=True,
                      residual=res, r_scale=r_scale, r_shift=r_shift)
    return out.reshape(N, Ho, Wo, -1)


def resnet_forward(params, x_nchw):
    x = jnp.transpose(x_nchw.astype(jnp.float32), (0, 2, 3, 1)).astype(jnp.bfloat16)
    N = x.shape[0]

    # Stem: 7x7 s2 p3 conv + bn + relu, then MaxPool2d(3, stride=3, pad=1).
    patches, Ho, Wo = _im2col(x, 7, 7, 2, 3)
    M = N * Ho * Wo
    y, sc, sh = conv_bn(patches, params["stem"], M)
    a = norm_pallas(y, sc, sh, M, relu=True).reshape(N, Ho, Wo, -1)
    a = maxpool_pallas(a, k=3, stride=3, pad=1)

    for blocks in params["layers"]:
        for blk in blocks:
            a = resblock_forward(a, blk)

    logits = head_pallas(a, params["fc_wmat"], params["fc_b"])
    return logits[:, :params["num_classes"]]


# ---------------------------------------------------------------------------
if __name__ == "__main__":
    key = jax.random.PRNGKey(0)
    kx, kp = jax.random.split(key)

    layers = [1, 1, 1, 1]     # small synthetic depth (ResNet.__init__ takes `layers`)
    img_ch = 3
    num_classes = 10

    params = init_resnet_params(kp, layers, img_ch, num_classes)
    x = jax.random.normal(kx, (2, img_ch, 32, 32), dtype=jnp.float32)  # NCHW like PyTorch

    logits = resnet_forward(params, x)
    logits = jax.block_until_ready(logits)
    assert logits.shape == (2, num_classes)
    assert bool(jnp.all(jnp.isfinite(logits)))
    print("KERNEL_OK")
</pallas_src>

<mosaic_0001>
module attributes {stable_mosaic.version = 11 : i64} {
  func.func @kernel(%arg0: i32, %arg1: i32, %arg2: i32, %arg3: memref<512x256xbf16, #tpu.memory_space<vmem>>, %arg4: memref<256x128xbf16, #tpu.memory_space<vmem>>, %arg5: memref<512x128xbf16, #tpu.memory_space<vmem>>, %arg6: memref<1x2x128xf32, #tpu.memory_space<vmem>>, %arg7: memref<512x128xf32, #tpu.memory_space<vmem>>) attributes {dimension_semantics = [#tpu.dimension_semantics<parallel>, #tpu.dimension_semantics<parallel>, #tpu.dimension_semantics<arbitrary>], iteration_bounds = array<i64: 1, 1, 1>, scalar_prefetch = 0 : i64, scratch_operands = 1 : i64, tpu.core_type = #tpu.core_type<tc>, window_params = [{transform_indices = @transform_0, window_bounds = array<i64: 512, 256>}, {transform_indices = @transform_1, window_bounds = array<i64: 256, 128>}, {transform_indices = @transform_2, window_bounds = array<i64: 512, 128>}, {transform_indices = @transform_3, window_bounds = array<i64: 1, 2, 128>}]} {
    %c0_i32 = arith.constant 0 : i32
    %0 = arith.cmpi eq, %arg2, %c0_i32 : i32
    %1 = arith.extui %0 : i1 to i32
    %c0_i32_0 = arith.constant 0 : i32
    %2 = arith.cmpi ne, %1, %c0_i32_0 : i32
    scf.if %2 {
      %cst_10 = arith.constant 0.000000e+00 : f32
      %12 = vector.broadcast %cst_10 : f32 to vector<512x128xf32>
      %c0_11 = arith.constant 0 : index
      %c0_12 = arith.constant 0 : index
      %13 = vector.load %arg7[%c0_11, %c0_12] : memref<512x128xf32, #tpu.memory_space<vmem>>, vector<512x128xf32>
      tpu.vector_store %arg7[%c0_11, %c0_12], %12 {strides = array<i32>} : memref<512x128xf32, #tpu.memory_space<vmem>>, vector<512x128xf32>,
    } else {
    }
    %c0 = arith.constant 0 : index
    %c0_1 = arith.constant 0 : index
    %3 = vector.load %arg7[%c0, %c0_1] : memref<512x128xf32, #tpu.memory_space<vmem>>, vector<512x128xf32>
    %c0_2 = arith.constant 0 : index
    %c0_3 = arith.constant 0 : index
    %4 = vector.load %arg3[%c0_2, %c0_3] : memref<512x256xbf16, #tpu.memory_space<vmem>>, vector<512x256xbf16>
    %c0_4 = arith.constant 0 : index
    %c0_5 = arith.constant 0 : index
    %5 = vector.load %arg4[%c0_4, %c0_5] : memref<256x128xbf16, #tpu.memory_space<vmem>>, vector<256x128xbf16>
    %cst = arith.constant dense<0.000000e+00> : vector<512x128xf32>
    %6 = tpu.matmul %4, %5, %cst {dimension_numbers = #tpu.dot_dimension_numbers<[1], [0], [0], [1], [0, 0, 1, 1], [], []>} : vector<512x256xbf16>, vector<256x128xbf16>, vector<512x128xf32> -> vector<512x128xf32>
    %7 = arith.addf %3, %6 : vector<512x128xf32>
    %c0_6 = arith.constant 0 : index
    %c0_7 = arith.constant 0 : index
    %8 = vector.load %arg7[%c0_6, %c0_7] : memref<512x128xf32, #tpu.memory_space<vmem>>, vector<512x128xf32>
    tpu.vector_store %arg7[%c0_6, %c0_7], %7 {strides = array<i32>} : memref<512x128xf32, #tpu.memory_space<vmem>>, vector<512x128xf32>,
    %c0_i32_8 = arith.constant 0 : i32
    %9 = arith.cmpi eq, %arg2, %c0_i32_8 : i32
    %10 = arith.extui %9 : i1 to i32
    %c0_i32_9 = arith.constant 0 : i32
    %11 = arith.cmpi ne, %10, %c0_i32_9 : i32
    scf.if %11 {
      %c0_10 = arith.constant 0 : index
      %c0_11 = arith.constant 0 : index
      %12 = vector.load %arg7[%c0_10, %c0_11] : memref<512x128xf32, #tpu.memory_space<vmem>>, vector<512x128xf32>
      %13 = arith.truncf %12 : vector<512x128xf32> to vector<512x128xbf16>
      %c0_12 = arith.constant 0 : index
      %c0_13 = arith.constant 0 : index
      %14 = vector.load %arg5[%c0_12, %c0_13] : memref<512x128xbf16, #tpu.memory_space<vmem>>, vector<512x128xbf16>
      tpu.vector_store %arg5[%c0_12, %c0_13], %13 {strides = array<i32>} : memref<512x128xbf16, #tpu.memory_space<vmem>>, vector<512x128xbf16>,
      %cst_14 = arith.constant dense<0.000000e+00> : vector<128xf32>
      %15 = vector.multi_reduction <add>, %12, %cst_14 [0] : vector<512x128xf32> to vector<128xf32>
      %16 = vector.shape_cast %15 : vector<128xf32> to vector<1x128xf32>
      %17 = arith.mulf %12, %12 : vector<512x128xf32>
      %cst_15 = arith.constant dense<0.000000e+00> : vector<128xf32>
      %18 = vector.multi_reduction <add>, %17, %cst_15 [0] : vector<512x128xf32> to vector<128xf32>
      %19 = vector.shape_cast %18 : vector<128xf32> to vector<1x128xf32>
      %20 = tpu.concatenate %16, %19 in 0 : vector<1x128xf32>, vector<1x128xf32> -> vector<2x128xf32>
      %21 = vector.shape_cast %20 : vector<2x128xf32> to vector<1x2x128xf32>
      %c0_16 = arith.constant 0 : index
      %c0_17 = arith.constant 0 : index
      %c0_18 = arith.constant 0 : index
      %22 = vector.load %arg6[%c0_16, %c0_17, %c0_18] : memref<1x2x128xf32, #tpu.memory_space<vmem>>, vector<1x2x128xf32>
      tpu.vector_store %arg6[%c0_16, %c0_17, %c0_18], %21 {strides = array<i32>} : memref<1x2x128xf32, #tpu.memory_space<vmem>>, vector<1x2x128xf32>,
    } else {
    }
    return
  }
  func.func @transform_0(%arg0: i32, %arg1: i32, %arg2: i32) -> (i32, i32) {
    %c0_i32 = arith.constant 0 : i32
    return %arg0, %arg2 : i32, i32
  }
  func.func @transform_1(%arg0: i32, %arg1: i32, %arg2: i32) -> (i32, i32) {
    %c0_i32 = arith.constant 0 : i32
    return %arg2, %arg1 : i32, i32
  }
  func.func @transform_2(%arg0: i32, %arg1: i32, %arg2: i32) -> (i32, i32) {
    %c0_i32 = arith.constant 0 : i32
    return %arg0, %arg1 : i32, i32
  }
  func.func @transform_3(%arg0: i32, %arg1: i32, %arg2: i32) -> (i32, i32, i32) {
    %c0_i32 = arith.constant 0 : i32
    %c0_i32_0 = arith.constant 0 : i32
    return %arg0, %c0_i32, %arg1 : i32, i32, i32
  }
}

</mosaic_0001>

<bundles_post_ra>
// kernel: tpu_custom_call.1
= control target key start
LH: loop header
LB: loop body
LE: loop exit
PB: predicated region body
PF: predicated region fallthrough
CT: control target
= control target key end

     0   :  { %9 = vsyncpa [#allocation4], 0  ;;  %s2772_s0 = inlined_call_operand.hbm [shape: bf16[512,256], index: 0, kind: input, shape index: {}]   ;;  %s2773_s1 = inlined_call_operand.hbm [shape: bf16[256,128], index: 1, kind: input, shape index: {}]   ;;  %s2774_s2 = inlined_call_operand.hbm [shape: bf16[512,128], index: 2, kind: output, shape index: {0}]   ;;  %s2775_s3 = inlined_call_operand.hbm [shape: f32[1,2,128], index: 3, kind: output, shape index: {1}]  }
   0x1   :  { %10 = vsyncpa [#allocation7], 0 }
   0x2   :  { %11 = vsyncpa [#allocation5], 0 }
   0x3   :  { %12 = vsyncpa [#allocation10], 0  ;;  %s2369_s12 = smov [#allocation3]  }
   0x4   :  { %s18_s13 = sshll.u32 %s2369_s12, 4  ;;  %s19_s13 = int_to_ptr.vmem [resolvable:$true] %s18_s13 }
   0x5   :  { %s2289_s14 = scalar_lea.vmem %s19_s13, 8192  ;;  %p2294_p1 = scmp.lt.s32.totalorder %s19_s13, %s19_s13 }
   0x6   :  { %p2290_p0 = scmp.ne.s32.totalorder %s19_s13, %s2289_s14  ;;  %p2295_p2 = scmp.lt.s32.totalorder %s2289_s14, %s2289_s14 }
   0x8   :  { %p2296_p3 = por %p2295_p2, %p2294_p1 }
   0xa   :  { %p2297_p4 = pnand %p2296_p3, %p2290_p0 }
   0xc   :  { %2300 = shalt.err (!%p2297_p4)
}
   0xd   :  { %s2370_s15 = smov 128   ;;  %s2371_s16 = smov 8  }
   0xe   :  { %24 = dma.hbm_to_vmem [thread:$0]  %s2772_s0, 8192, %s19_s13, [#allocation4], %s2370_s15, %s2370_s15, %s2371_s16  }
   0xf   :  { %s2372_s19 = smov [#allocation6]  }
  0x10   :  { %s30_s20 = sshll.u32 %s2372_s19, 4  ;;  %s31_s20 = int_to_ptr.vmem [resolvable:$true] %s30_s20 }
  0x11   :  { %s2309_s21 = scalar_lea.vmem %s31_s20, 2048  ;;  %p2314_p6 = scmp.lt.s32.totalorder %s31_s20, %s31_s20 }
  0x12   :  { %p2310_p5 = scmp.ne.s32.totalorder %s31_s20, %s2309_s21  ;;  %p2315_p7 = scmp.lt.s32.totalorder %s2309_s21, %s2309_s21 }
  0x14   :  { %p2316_p8 = por %p2315_p7, %p2314_p6 }
  0x16   :  { %p2317_p9 = pnand %p2316_p8, %p2310_p5 }
  0x18   :  { %2320 = shalt.err (!%p2317_p9)
}
  0x19   :  { %s2373_s22 = smov 64   ;;  %s2374_s23 = smov 4  }
  0x1a   :  { %36 = dma.hbm_to_vmem [thread:$0]  %s2773_s1, 2048, %s31_s20, [#allocation7], %s2373_s22, %s2373_s22, %s2374_s23  }
  0x1b   :  { %2361 = dma.done.wait [#allocation4], 8192  }
  0x1c   :  { %2362 = vsyncadd [#allocation4], 4294959104 }
  0x1d   :  { %2363 = dma.done.wait [#allocation7], 2048  }
  0x1e   :  { %2364 = vsyncadd [#allocation7], 4294965248  ;;  %v2375_v0 = vmov 0   ;;  %v2169_v1 = vld [vmem:[#allocation6 + $0x38] sm:$0xff]   ;;  %v2170_v2 = vld [vmem:[#allocation6 + $0x30] sm:$0xff]   ;;  %s2376_s0 = smov [#allocation8]  }
  0x1f   :  { %688 = vmatprep.subr.bf16.mxu0 %v2375_v0  ;;  %2128 = vmatprep.subr.bf16.mxu1 %v2375_v0  ;;  %v2171_v3 = vld [vmem:[#allocation6 + $0x28] sm:$0xff]   ;;  %v2172_v4 = vld [vmem:[#allocation6 + $0x20] sm:$0xff]   ;;  %v2173_v5 = vld [vmem:[#allocation6 + $0x18] sm:$0xff]   ;;  %s1702_s1 = sshll.u32 %s2376_s0, 4  ;;  %s1703_s1 = int_to_ptr.vmem [resolvable:$true] %s1702_s1 }
  0x20   :  { %689 = vmatpush1.bf16.msra.mxu0 %v2169_v1  ;;  %2144 = vmatpush1.bf16.msra.mxu1 %v2169_v1  ;;  %v2187_v6 = vld [vmem:[#allocation3 + $0x4] ss:$8 sps:$4 sm:$0xff]   ;;  %v2174_v7 = vld [vmem:[#allocation6 + $0x10] sm:$0xff]   ;;  %v2177_v11 = vld [vmem:[#allocation6 + $0x78] sm:$0xff]   ;;  %s2321_s26 = scalar_lea.vmem %s1703_s1, 4096  ;;  %p2326_p11 = scmp.lt.s32.totalorder %s1703_s1, %s1703_s1 }
  0x21   :  { %690 = vmatprep.subr.bf16.mxu0 %v2375_v0  ;;  %2129 = vmatprep.subr.bf16.mxu1 %v2375_v0  ;;  %v2175_v8 = vld [vmem:[#allocation6 + $0x8] sm:$0xff]   ;;  %v2176_v9 = vld [vmem:[#allocation6] sm:$0xff]   ;;  %v2178_v12 = vld [vmem:[#allocation6 + $0x70] sm:$0xff]   ;;  %p2322_p10 = scmp.ne.s32.totalorder %s1703_s1, %s2321_s26  ;;  %p2327_p12 = scmp.lt.s32.totalorder %s2321_s26, %s2321_s26 }
  0x22   :  { %720 = vmatprep.mubr.bf16.mxu0 %v2187_v6  ;;  %v2211_v10 = vld [vmem:[#allocation3 + $0x104] ss:$8 sps:$4 sm:$0xff]   ;;  %v2181_v15 = vld [vmem:[#allocation6 + $0x58] sm:$0xff]   ;;  %v2182_v16 = vld [vmem:[#allocation6 + $0x50] sm:$0xff]  }
  0x23   :  { %848 = vmatprep.mubr.bf16.mxu1 %v2211_v10  ;;  %v2179_v13 = vld [vmem:[#allocation6 + $0x68] sm:$0xff]   ;;  %v2180_v14 = vld [vmem:[#allocation6 + $0x60] sm:$0xff]   ;;  %v2188_v21 = vld [vmem:[#allocation3 + $0x14] ss:$8 sps:$4 sm:$0xff]   ;;  %p2328_p13 = por %p2327_p12, %p2326_p11 }
  0x24   :  { %691 = vmatpush1.bf16.msra.mxu0 %v2170_v2  ;;  %2145 = vmatpush1.bf16.msra.mxu1 %v2170_v2  ;;  %v2183_v17 = vld [vmem:[#allocation6 + $0x48] sm:$0xff]   ;;  %v2184_v18 = vld [vmem:[#allocation6 + $0x40] sm:$0xff]   ;;  %v2215_v22 = vld [vmem:[#allocation3 + $0x114] ss:$8 sps:$4 sm:$0xff]  }
  0x25   :  { %692 = vmatprep.subr.bf16.mxu0 %v2375_v0  ;;  %2130 = vmatprep.subr.bf16.mxu1 %v2375_v0  ;;  %v2185_v19 = vld [vmem:[#allocation3] ss:$8 sps:$4 sm:$0xff]   ;;  %v2190_v23 = vld [vmem:[#allocation3 + $0x10] ss:$8 sps:$4 sm:$0xff]   ;;  %v2191_v25 = vld [vmem:[#allocation3 + $0x24] ss:$8 sps:$4 sm:$0xff]   ;;  %p2329_p0 = pnand %p2328_p13, %p2322_p10 }
  0x26   :  { %v2209_v20 = vld [vmem:[#allocation3 + $0x100] ss:$8 sps:$4 sm:$0xff]   ;;  %v2217_v24 = vld [vmem:[#allocation3 + $0x110] ss:$8 sps:$4 sm:$0xff]   ;;  %v2221_v26 = vld [vmem:[#allocation3 + $0x124] ss:$8 sps:$4 sm:$0xff]  }
  0x27   :  { %v2193_v27 = vld [vmem:[#allocation3 + $0x20] ss:$8 sps:$4 sm:$0xff]   ;;  %v2194_v29 = vld [vmem:[#allocation3 + $0x34] ss:$8 sps:$4 sm:$0xff]   ;;  %v2196_v31 = vld [vmem:[#allocation3 + $0x30] ss:$8 sps:$4 sm:$0xff]  }
  0x28   :  { %693 = vmatpush1.bf16.msra.mxu0 %v2171_v3  ;;  %2146 = vmatpush1.bf16.msra.mxu1 %v2171_v3  ;;  %v2223_v28 = vld [vmem:[#allocation3 + $0x120] ss:$8 sps:$4 sm:$0xff]   ;;  %v2227_v30 = vld [vmem:[#allocation3 + $0x134] ss:$8 sps:$4 sm:$0xff]   ;;  %v2229_v32 = vld [vmem:[#allocation3 + $0x130] ss:$8 sps:$4 sm:$0xff]  }
  0x29   :  { %694 = vmatprep.subr.bf16.mxu0 %v2375_v0  ;;  %2131 = vmatprep.subr.bf16.mxu1 %v2375_v0  ;;  %v2197_v33 = vld [vmem:[#allocation3 + $0x44] ss:$8 sps:$4 sm:$0xff]   ;;  %v2199_v35 = vld [vmem:[#allocation3 + $0x40] ss:$8 sps:$4 sm:$0xff]   ;;  %v2200_v37 = vld [vmem:[#allocation3 + $0x54] ss:$8 sps:$4 sm:$0xff]  }
  0x2a   :  { %v2233_v34 = vld [vmem:[#allocation3 + $0x144] ss:$8 sps:$4 sm:$0xff]   ;;  %v2235_v36 = vld [vmem:[#allocation3 + $0x140] ss:$8 sps:$4 sm:$0xff]   ;;  %v2239_v38 = vld [vmem:[#allocation3 + $0x154] ss:$8 sps:$4 sm:$0xff]  }
  0x2b   :  { %v2202_v39 = vld [vmem:[#allocation3 + $0x50] ss:$8 sps:$4 sm:$0xff]   ;;  %v2203_v41 = vld [vmem:[#allocation3 + $0x64] ss:$8 sps:$4 sm:$0xff]   ;;  %v2205_v43 = vld [vmem:[#allocation3 + $0x60] ss:$8 sps:$4 sm:$0xff]  }
  0x2c   :  { %695 = vmatpush1.bf16.msra.mxu0 %v2172_v4  ;;  %2147 = vmatpush1.bf16.msra.mxu1 %v2172_v4  ;;  %v2241_v40 = vld [vmem:[#allocation3 + $0x150] ss:$8 sps:$4 sm:$0xff]   ;;  %v2245_v42 = vld [vmem:[#allocation3 + $0x164] ss:$8 sps:$4 sm:$0xff]   ;;  %v2247_v44 = vld [vmem:[#allocation3 + $0x160] ss:$8 sps:$4 sm:$0xff]  }
  0x2d   :  { %696 = vmatprep.subr.bf16.mxu0 %v2375_v0  ;;  %2132 = vmatprep.subr.bf16.mxu1 %v2375_v0  ;;  %v2206_v45 = vld [vmem:[#allocation3 + $0x74] ss:$8 sps:$4 sm:$0xff]   ;;  %v2208_v47 = vld [vmem:[#allocation3 + $0x70] ss:$8 sps:$4 sm:$0xff]   ;;  %v2212_v49 = vld [vmem:[#allocation3 + $0x84] ss:$8 sps:$4 sm:$0xff]  }
  0x2e   :  { %v2251_v46 = vld [vmem:[#allocation3 + $0x174] ss:$8 sps:$4 sm:$0xff]   ;;  %v2253_v48 = vld [vmem:[#allocation3 + $0x170] ss:$8 sps:$4 sm:$0xff]   ;;  %v2257_v50 = vld [vmem:[#allocation3 + $0x184] ss:$8 sps:$4 sm:$0xff]  }
  0x2f   :  { %v2214_v51 = vld [vmem:[#allocation3 + $0x80] ss:$8 sps:$4 sm:$0xff]   ;;  %v2218_v53 = vld [vmem:[#allocation3 + $0x94] ss:$8 sps:$4 sm:$0xff]   ;;  %v2220_v55 = vld [vmem:[#allocation3 + $0x90] ss:$8 sps:$4 sm:$0xff]  }
  0x30   :  { %697 = vmatpush1.bf16.msra.mxu0 %v2173_v5  ;;  %2148 = vmatpush1.bf16.msra.mxu1 %v2173_v5  ;;  %v2259_v52 = vld [vmem:[#allocation3 + $0x180] ss:$8 sps:$4 sm:$0xff]   ;;  %v2260_v54 = vld [vmem:[#allocation3 + $0x194] ss:$8 sps:$4 sm:$0xff]   ;;  %v2262_v56 = vld [vmem:[#allocation3 + $0x190] ss:$8 sps:$4 sm:$0xff]  }
  0x31   :  { %698 = vmatprep.subr.bf16.mxu0 %v2375_v0  ;;  %2133 = vmatprep.subr.bf16.mxu1 %v2375_v0  ;;  %v2224_v57 = vld [vmem:[#allocation3 + $0xa4] ss:$8 sps:$4 sm:$0xff]   ;;  %v2226_v59 = vld [vmem:[#allocation3 + $0xa0] ss:$8 sps:$4 sm:$0xff]   ;;  %v2230_v61 = vld [vmem:[#allocation3 + $0xb4] ss:$8 sps:$4 sm:$0xff]  }
  0x32   :  { %v2263_v58 = vld [vmem:[#allocation3 + $0x1a4] ss:$8 sps:$4 sm:$0xff]   ;;  %v2265_v60 = vld [vmem:[#allocation3 + $0x1a0] ss:$8 sps:$4 sm:$0xff]   ;;  %v2266_v62 = vld [vmem:[#allocation3 + $0x1b4] ss:$8 sps:$4 sm:$0xff]  }
  0x33   :  { %v2232_v63 = vld [vmem:[#allocation3 + $0xb0] ss:$8 sps:$4 sm:$0xff]   ;;  %v2236_v1 = vld [vmem:[#allocation3 + $0xc4] ss:$8 sps:$4 sm:$0xff]   ;;  %v2238_v3 = vld [vmem:[#allocation3 + $0xc0] ss:$8 sps:$4 sm:$0xff]  }
  0x34   :  { %699 = vmatpush1.bf16.msra.mxu0 %v2174_v7  ;;  %2149 = vmatpush1.bf16.msra.mxu1 %v2174_v7  ;;  %v2269_v2 = vld [vmem:[#allocation3 + $0x1c4] ss:$8 sps:$4 sm:$0xff]   ;;  %v2271_v4 = vld [vmem:[#allocation3 + $0x1c0] ss:$8 sps:$4 sm:$0xff]   ;;  %v2242_v5 = vld [vmem:[#allocation3 + $0xd4] ss:$8 sps:$4 sm:$0xff]  }
  0x35   :  { %700 = vmatprep.subr.bf16.mxu0 %v2375_v0  ;;  %2134 = vmatprep.subr.bf16.mxu1 %v2375_v0  ;;  %v2272_v6 = vld [vmem:[#allocation3 + $0x1d4] ss:$8 sps:$4 sm:$0xff]   ;;  %v2244_v7 = vld [vmem:[#allocation3 + $0xd0] ss:$8 sps:$4 sm:$0xff]   ;;  %v2275_v10 = vld [vmem:[#allocation3 + $0x1e4] ss:$8 sps:$4 sm:$0xff]  }
  0x38   :  { %701 = vmatpush1.bf16.msra.mxu0 %v2175_v8  ;;  %2150 = vmatpush1.bf16.msra.mxu1 %v2175_v8  ;;  %v2274_v8 = vld [vmem:[#allocation3 + $0x1d0] ss:$8 sps:$4 sm:$0xff]  }
  0x39   :  { %702 = vmatprep.subr.bf16.mxu0 %v2375_v0  ;;  %2135 = vmatprep.subr.bf16.mxu1 %v2375_v0 }
  0x3c   :  { %703 = vmatpush1.bf16.msra.mxu0 %v2176_v9  ;;  %2151 = vmatpush1.bf16.msra.mxu1 %v2176_v9  ;;  %v2248_v9 = vld [vmem:[#allocation3 + $0xe4] ss:$8 sps:$4 sm:$0xff]  }
  0x3d   :  { %704 = vmatprep.subr.bf16.mxu0 %v2375_v0  ;;  %2136 = vmatprep.subr.bf16.mxu1 %v2375_v0 }
  0x40   :  { %705 = vmatpush2.bf16.msra.mxu0 %v2177_v11  ;;  %2152 = vmatpush2.bf16.msra.mxu1 %v2177_v11  ;;  %v2250_v11 = vld [vmem:[#allocation3 + $0xe0] ss:$8 sps:$4 sm:$0xff]  }
  0x41   :  { %706 = vmatprep.subr.bf16.mxu0 %v2375_v0  ;;  %2137 = vmatprep.subr.bf16.mxu1 %v2375_v0 }
  0x44   :  { %707 = vmatpush2.bf16.msra.mxu0 %v2178_v12  ;;  %2153 = vmatpush2.bf16.msra.mxu1 %v2178_v12  ;;  %v2277_v12 = vld [vmem:[#allocation3 + $0x1e0] ss:$8 sps:$4 sm:$0xff]  }
  0x45   :  { %708 = vmatprep.subr.bf16.mxu0 %v2375_v0  ;;  %2138 = vmatprep.subr.bf16.mxu1 %v2375_v0 }
  0x48   :  { %709 = vmatpush2.bf16.msra.mxu0 %v2179_v13  ;;  %2154 = vmatpush2.bf16.msra.mxu1 %v2179_v13  ;;  %v2254_v13 = vld [vmem:[#allocation3 + $0xf4] ss:$8 sps:$4 sm:$0xff]  }
  0x49   :  { %710 = vmatprep.subr.bf16.mxu0 %v2375_v0  ;;  %2139 = vmatprep.subr.bf16.mxu1 %v2375_v0 }
  0x4c   :  { %711 = vmatpush2.bf16.msra.mxu0 %v2180_v14  ;;  %2155 = vmatpush2.bf16.msra.mxu1 %v2180_v14  ;;  %v2278_v14 = vld [vmem:[#allocation3 + $0x1f4] ss:$8 sps:$4 sm:$0xff]  }
  0x4d   :  { %712 = vmatprep.subr.bf16.mxu0 %v2375_v0  ;;  %2140 = vmatprep.subr.bf16.mxu1 %v2375_v0 }
  0x50   :  { %713 = vmatpush2.bf16.msra.mxu0 %v2181_v15  ;;  %2156 = vmatpush2.bf16.msra.mxu1 %v2181_v15  ;;  %v2256_v15 = vld [vmem:[#allocation3 + $0xf0] ss:$8 sps:$4 sm:$0xff]  }
  0x51   :  { %714 = vmatprep.subr.bf16.mxu0 %v2375_v0  ;;  %2141 = vmatprep.subr.bf16.mxu1 %v2375_v0 }
  0x54   :  { %715 = vmatpush2.bf16.msra.mxu0 %v2182_v16  ;;  %2157 = vmatpush2.bf16.msra.mxu1 %v2182_v16  ;;  %v2280_v16 = vld [vmem:[#allocation3 + $0x1f0] ss:$8 sps:$4 sm:$0xff]  }
  0x55   :  { %716 = vmatprep.subr.bf16.mxu0 %v2375_v0  ;;  %2142 = vmatprep.subr.bf16.mxu1 %v2375_v0 }
  0x58   :  { %717 = vmatpush2.bf16.msra.mxu0 %v2183_v17  ;;  %2158 = vmatpush2.bf16.msra.mxu1 %v2183_v17 }
  0x59   :  { %718 = vmatprep.subr.bf16.mxu0 %v2375_v0  ;;  %2143 = vmatprep.subr.bf16.mxu1 %v2375_v0  ;;  %v2268_v0 = vld [vmem:[#allocation3 + $0x1b0] ss:$8 sps:$4 sm:$0xff]  }
  0x5c   :  { %719 = vmatpush2.bf16.msra.mxu0 %v2184_v18  ;;  %2159 = vmatpush2.bf16.msra.mxu1 %v2184_v18 }
  0x5f   :  { %721 = vmatmul.mubr.bf16.vlgmr.msra.gmra.mxu0 %v2185_v19  ;;  %849 = vmatmul.mubr.bf16.vlgmr.msra.gmra.mxu1 %v2209_v20 }
  0x60   :  { %728 = vmatprep.mubr.bf16.mxu0 %v2188_v21  ;;  %856 = vmatprep.mubr.bf16.mxu1 %v2215_v22 }
  0x67   :  { %729 = vmatmul.mubr.bf16.gmra.mxu0 %v2190_v23  ;;  %857 = vmatmul.mubr.bf16.gmra.mxu1 %v2217_v24 }
  0x68   :  { %736 = vmatprep.mubr.bf16.mxu0 %v2191_v25  ;;  %864 = vmatprep.mubr.bf16.mxu1 %v2221_v26 }
  0x6f   :  { %737 = vmatmul.mubr.bf16.gmra.mxu0 %v2193_v27  ;;  %865 = vmatmul.mubr.bf16.gmra.mxu1 %v2223_v28 }
  0x70   :  { %744 = vmatprep.mubr.bf16.mxu0 %v2194_v29  ;;  %872 = vmatprep.mubr.bf16.mxu1 %v2227_v30 }
  0x77   :  { %745 = vmatmul.mubr.bf16.gmra.mxu0 %v2196_v31  ;;  %873 = vmatmul.mubr.bf16.gmra.mxu1 %v2229_v32 }
  0x78   :  { %752 = vmatprep.mubr.bf16.mxu0 %v2197_v33  ;;  %880 = vmatprep.mubr.bf16.mxu1 %v2233_v34 }
  0x7f   :  { %753 = vmatmul.mubr.bf16.gmra.mxu0 %v2199_v35  ;;  %881 = vmatmul.mubr.bf16.gmra.mxu1 %v2235_v36 }
  0x80   :  { %760 = vmatprep.mubr.bf16.mxu0 %v2200_v37  ;;  %888 = vmatprep.mubr.bf16.mxu1 %v2239_v38 }
  0x87   :  { %761 = vmatmul.mubr.bf16.gmra.mxu0 %v2202_v39  ;;  %889 = vmatmul.mubr.bf16.gmra.mxu1 %v2241_v40 }
  0x88   :  { %768 = vmatprep.mubr.bf16.mxu0 %v2203_v41  ;;  %896 = vmatprep.mubr.bf16.mxu1 %v2245_v42 }
  0x8f   :  { %769 = vmatmul.mubr.bf16.gmra.mxu0 %v2205_v43  ;;  %897 = vmatmul.mubr.bf16.gmra.mxu1 %v2247_v44 }
  0x90   :  { %776 = vmatprep.mubr.bf16.mxu0 %v2206_v45  ;;  %904 = vmatprep.mubr.bf16.mxu1 %v2251_v46 }
  0x97   :  { %777 = vmatmul.mubr.bf16.gmra.mxu0 %v2208_v47  ;;  %905 = vmatmul.mubr.bf16.gmra.mxu1 %v2253_v48 }
  0x98   :  { %784 = vmatprep.mubr.bf16.mxu0 %v2212_v49  ;;  %912 = vmatprep.mubr.bf16.mxu1 %v2257_v50 }
  0x9f   :  { %785 = vmatmul.mubr.bf16.gmra.mxu0 %v2214_v51  ;;  %913 = vmatmul.mubr.bf16.gmra.mxu1 %v2259_v52 }
  0xa0   :  { %792 = vmatprep.mubr.bf16.mxu0 %v2218_v53  ;;  %920 = vmatprep.mubr.bf16.mxu1 %v2260_v54 }
  0xa7   :  { %793 = vmatmul.mubr.bf16.gmra.mxu0 %v2220_v55  ;;  %921 = vmatmul.mubr.bf16.gmra.mxu1 %v2262_v56 }
  0xa8   :  { %800 = vmatprep.mubr.bf16.mxu0 %v2224_v57  ;;  %928 = vmatprep.mubr.bf16.mxu1 %v2263_v58 }
  0xaf   :  { %801 = vmatmul.mubr.bf16.gmra.mxu0 %v2226_v59  ;;  %929 = vmatmul.mubr.bf16.gmra.mxu1 %v2265_v60 }
  0xb0   :  { %808 = vmatprep.mubr.bf16.mxu0 %v2230_v61  ;;  %936 = vmatprep.mubr.bf16.mxu1 %v2266_v62 }
  0xb7   :  { %809 = vmatmul.mubr.bf16.gmra.mxu0 %v2232_v63  ;;  %937 = vmatmul.mubr.bf16.gmra.mxu1 %v2268_v0 }
  0xb8   :  { %816 = vmatprep.mubr.bf16.mxu0 %v2236_v1  ;;  %944 = vmatprep.mubr.bf16.mxu1 %v2269_v2 }
  0xbf   :  { %817 = vmatmul.mubr.bf16.gmra.mxu0 %v2238_v3  ;;  %945 = vmatmul.mubr.bf16.gmra.mxu1 %v2271_v4 }
  0xc0   :  { %824 = vmatprep.mubr.bf16.mxu0 %v2242_v5  ;;  %952 = vmatprep.mubr.bf16.mxu1 %v2272_v6 }
  0xc7   :  { %825 = vmatmul.mubr.bf16.gmra.mxu0 %v2244_v7  ;;  %953 = vmatmul.mubr.bf16.gmra.mxu1 %v2274_v8 }
  0xc8   :  { %832 = vmatprep.mubr.bf16.mxu0 %v2248_v9  ;;  %960 = vmatprep.mubr.bf16.mxu1 %v2275_v10 }
  0xcf   :  { %833 = vmatmul.mubr.bf16.gmra.mxu0 %v2250_v11  ;;  %961 = vmatmul.mubr.bf16.gmra.mxu1 %v2277_v12 }
  0xd0   :  { %840 = vmatprep.mubr.bf16.mxu0 %v2254_v13  ;;  %968 = vmatprep.mubr.bf16.mxu1 %v2278_v14 }
  0xd7   :  { %841 = vmatmul.mubr.bf16.gmra.mxu0 %v2256_v15  ;;  %969 = vmatmul.mubr.bf16.gmra.mxu1 %v2280_v16 }
 0x11f   :  { %v2439_v17 = vpop.f32.mrf.mxu0  ;;  %v2441_v18 = vpop.f32.mrf.mxu1 }
 0x121   :  { %v724_v19 = vpop.f32.mrf.mxu0  ;;  %v852_v20 = vpop.f32.mrf.mxu1 }
 0x123   :  { %v2443_v21 = vpop.f32.mrf.mxu0  ;;  %v2445_v22 = vpop.f32.mrf.mxu1 }
 0x124   :  { %v1940_v23 = vpack.c.bf16 %v2443_v21, %v2439_v17  ;;  %v2020_v24 = vpack.c.bf16 %v2445_v22, %v2441_v18 }
 0x125   :  { %v727_v25 = vpop.f32.mrf.mxu0  ;;  %v855_v26 = vpop.f32.mrf.mxu1 }
 0x126   :  { %1941 = vst [vmem:[#allocation8] sm:$0xff] %v1940_v23   ;;  %2112 = vst [vmem:[#allocation8 + $0x80] sm:$0xff] %v2020_v24  }
 0x127   :  { %v2451_v27 = vpop.f32.mrf.mxu0  ;;  %v2453_v28 = vpop.f32.mrf.mxu1 }
 0x129   :  { %v732_v29 = vpop.f32.mrf.mxu0  ;;  %v860_v30 = vpop.f32.mrf.mxu1 }
 0x12b   :  { %v2455_v31 = vpop.f32.mrf.mxu0  ;;  %v2457_v32 = vpop.f32.mrf.mxu1 }
 0x12c   :  { %v1945_v33 = vpack.c.bf16 %v2455_v31, %v2451_v27  ;;  %v2025_v34 = vpack.c.bf16 %v2457_v32, %v2453_v28 }
 0x12d   :  { %v735_v35 = vpop.f32.mrf.mxu0  ;;  %v863_v36 = vpop.f32.mrf.mxu1 }
 0x12e   :  { %2097 = vst [vmem:[#allocation8 + $0x8] sm:$0xff] %v1945_v33   ;;  %2113 = vst [vmem:[#allocation8 + $0x88] sm:$0xff] %v2025_v34  }
 0x12f   :  { %v2463_v37 = vpop.f32.mrf.mxu0  ;;  %v2465_v38 = vpop.f32.mrf.mxu1 }
 0x131   :  { %v740_v39 = vpop.f32.mrf.mxu0  ;;  %v868_v40 = vpop.f32.mrf.mxu1 }
 0x133   :  { %v2467_v41 = vpop.f32.mrf.mxu0  ;;  %v2469_v42 = vpop.f32.mrf.mxu1 }
 0x134   :  { %v1950_v43 = vpack.c.bf16 %v2467_v41, %v2463_v37  ;;  %v2030_v44 = vpack.c.bf16 %v2469_v42, %v2465_v38 }
 0x135   :  { %v743_v45 = vpop.f32.mrf.mxu0  ;;  %v871_v46 = vpop.f32.mrf.mxu1 }
 0x136   :  { %2098 = vst [vmem:[#allocation8 + $0x10] sm:$0xff] %v1950_v43   ;;  %2114 = vst [vmem:[#allocation8 + $0x90] sm:$0xff] %v2030_v44   ;;  %v1562_v43 = vmul.f32 %v2443_v21, %v2443_v21  ;;  %v1561_v46 = vmul.f32 %v2439_v17, %v2439_v17 }
 0x137   :  { %v2475_v47 = vpop.f32.mrf.mxu0  ;;  %v2477_v48 = vpop.f32.mrf.mxu1 }
 0x139   :  { %v748_v49 = vpop.f32.mrf.mxu0  ;;  %v876_v50 = vpop.f32.mrf.mxu1 }
 0x13a   :  { %v1563_v49 = vmul.f32 %v2451_v27, %v2451_v27 }
 0x13b   :  { %v2479_v51 = vpop.f32.mrf.mxu0  ;;  %v2481_v52 = vpop.f32.mrf.mxu1 }
 0x13c   :  { %v1955_v53 = vpack.c.bf16 %v2479_v51, %v2475_v47  ;;  %v2035_v54 = vpack.c.bf16 %v2481_v52, %v2477_v48 }
 0x13d   :  { %v751_v55 = vpop.f32.mrf.mxu0  ;;  %v879_v56 = vpop.f32.mrf.mxu1 }
 0x13e   :  { %2099 = vst [vmem:[#allocation8 + $0x18] sm:$0xff] %v1955_v53   ;;  %2115 = vst [vmem:[#allocation8 + $0x98] sm:$0xff] %v2035_v54   ;;  %v1492_v54 = vadd.f32 %v2443_v21, %v2439_v17  ;;  %v1625_v55 = vadd.f32 %v1562_v43, %v1561_v46  ;;  %v1564_v56 = vmul.f32 %v2455_v31, %v2455_v31 }
 0x13f   :  { %v2487_v57 = vpop.f32.mrf.mxu0  ;;  %v2489_v58 = vpop.f32.mrf.mxu1 }
 0x141   :  { %v756_v59 = vpop.f32.mrf.mxu0  ;;  %v884_v60 = vpop.f32.mrf.mxu1 }
 0x143   :  { %v2491_v61 = vpop.f32.mrf.mxu0  ;;  %v2493_v62 = vpop.f32.mrf.mxu1 }
 0x144   :  { %v1960_v63 = vpack.c.bf16 %v2491_v61, %v2487_v57  ;;  %v2040_v0 = vpack.c.bf16 %v2493_v62, %v2489_v58 }
 0x145   :  { %v759_v1 = vpop.f32.mrf.mxu0  ;;  %v887_v2 = vpop.f32.mrf.mxu1 }
 0x146   :  { %2100 = vst [vmem:[#allocation8 + $0x20] sm:$0xff] %v1960_v63   ;;  %2116 = vst [vmem:[#allocation8 + $0xa0] sm:$0xff] %v2040_v0   ;;  %v1493_v63 = vadd.f32 %v1492_v54, %v2451_v27  ;;  %v1626_v0 = vadd.f32 %v1625_v55, %v1563_v49  ;;  %v1565_v1 = vmul.f32 %v2463_v37, %v2463_v37 }
 0x147   :  { %v2499_v3 = vpop.f32.mrf.mxu0  ;;  %v2501_v4 = vpop.f32.mrf.mxu1  ;;  %v1566_v27 = vmul.f32 %v2467_v41, %v2467_v41 }
 0x149   :  { %v764_v5 = vpop.f32.mrf.mxu0  ;;  %v892_v6 = vpop.f32.mrf.mxu1 }
 0x14a   :  { %v1494_v6 = vadd.f32 %v1493_v63, %v2455_v31  ;;  %v1567_v31 = vmul.f32 %v2475_v47, %v2475_v47 }
 0x14b   :  { %v2503_v7 = vpop.f32.mrf.mxu0  ;;  %v2505_v8 = vpop.f32.mrf.mxu1 }
 0x14c   :  { %v1965_v9 = vpack.c.bf16 %v2503_v7, %v2499_v3  ;;  %v2045_v10 = vpack.c.bf16 %v2505_v8, %v2501_v4 }
 0x14d   :  { %v767_v11 = vpop.f32.mrf.mxu0  ;;  %v895_v12 = vpop.f32.mrf.mxu1 }
 0x14e   :  { %2101 = vst [vmem:[#allocation8 + $0x28] sm:$0xff] %v1965_v9   ;;  %2117 = vst [vmem:[#allocation8 + $0xa8] sm:$0xff] %v2045_v10   ;;  %v1627_v9 = vadd.f32 %v1626_v0, %v1564_v56  ;;  %v1495_v12 = vadd.f32 %v1494_v6, %v2463_v37  ;;  %v1572_v6 = vmul.f32 %v2503_v7, %v2503_v7 }
 0x14f   :  { %v2511_v13 = vpop.f32.mrf.mxu0  ;;  %v2513_v14 = vpop.f32.mrf.mxu1 }
 0x151   :  { %v772_v15 = vpop.f32.mrf.mxu0  ;;  %v900_v16 = vpop.f32.mrf.mxu1 }
 0x152   :  { %v1628_v15 = vadd.f32 %v1627_v9, %v1565_v1 }
 0x153   :  { %v2515_v19 = vpop.f32.mrf.mxu0  ;;  %v2517_v20 = vpop.f32.mrf.mxu1 }
 0x154   :  { %v1970_v23 = vpack.c.bf16 %v2515_v19, %v2511_v13  ;;  %v2050_v24 = vpack.c.bf16 %v2517_v20, %v2513_v14 }
 0x155   :  { %v775_v25 = vpop.f32.mrf.mxu0  ;;  %v903_v26 = vpop.f32.mrf.mxu1 }
 0x156   :  { %2102 = vst [vmem:[#allocation8 + $0x30] sm:$0xff] %v1970_v23   ;;  %2118 = vst [vmem:[#allocation8 + $0xb0] sm:$0xff] %v2050_v24   ;;  %v1496_v24 = vadd.f32 %v1495_v12, %v2467_v41  ;;  %v1629_v25 = vadd.f32 %v1628_v15, %v1566_v27  ;;  %v1568_v26 = vmul.f32 %v2479_v51, %v2479_v51 }
 0x157   :  { %v2523_v29 = vpop.f32.mrf.mxu0  ;;  %v2525_v30 = vpop.f32.mrf.mxu1  ;;  %v1573_v27 = vmul.f32 %v2511_v13, %v2511_v13 }
 0x158   :  { %v1497_v37 = vadd.f32 %v1496_v24, %v2475_v47  ;;  %v1570_v47 = vmul.f32 %v2491_v61, %v2491_v61 }
 0x159   :  { %v780_v33 = vpop.f32.mrf.mxu0  ;;  %v908_v34 = vpop.f32.mrf.mxu1 }
 0x15b   :  { %v2527_v35 = vpop.f32.mrf.mxu0  ;;  %v2529_v36 = vpop.f32.mrf.mxu1 }
 0x15c   :  { %v1975_v39 = vpack.c.bf16 %v2527_v35, %v2523_v29  ;;  %v2055_v40 = vpack.c.bf16 %v2529_v36, %v2525_v30 }
 0x15d   :  { %v783_v44 = vpop.f32.mrf.mxu0  ;;  %v911_v45 = vpop.f32.mrf.mxu1 }
 0x15e   :  { %2103 = vst [vmem:[#allocation8 + $0x38] sm:$0xff] %v1975_v39   ;;  %2119 = vst [vmem:[#allocation8 + $0xb8] sm:$0xff] %v2055_v40   ;;  %v1630_v39 = vadd.f32 %v1629_v25, %v1567_v31  ;;  %v1569_v40 = vmul.f32 %v2487_v57, %v2487_v57  ;;  %v1498_v45 = vadd.f32 %v1497_v37, %v2479_v51 }
 0x15f   :  { %v2541_v50 = vpop.f32.mrf.mxu0  ;;  %v2543_v53 = vpop.f32.mrf.mxu1  ;;  %v1571_v51 = vmul.f32 %v2499_v3, %v2499_v3 }
 0x160   :  { %v1631_v49 = vadd.f32 %v1630_v39, %v1568_v26  ;;  %v1499_v56 = vadd.f32 %v1498_v45, %v2487_v57  ;;  %v1576_v45 = vmul.f32 %v2527_v35, %v2527_v35 }
 0x161   :  { %v788_v59 = vpop.f32.mrf.mxu0  ;;  %v916_v60 = vpop.f32.mrf.mxu1 }
 0x162   :  { %v1632_v59 = vadd.f32 %v1631_v49, %v1569_v40  ;;  %v1500_v0 = vadd.f32 %v1499_v56, %v2491_v61 }
 0x163   :  { %v2552_v2 = vpop.f32.mrf.mxu0  ;;  %v2554_v5 = vpop.f32.mrf.mxu1 }
 0x164   :  { %v1980_v17 = vpack.c.bf16 %v2552_v2, %v2541_v50  ;;  %v2060_v21 = vpack.c.bf16 %v2554_v5, %v2543_v53  ;;  %v1633_v1 = vadd.f32 %v1632_v59, %v1570_v47  ;;  %v1501_v57 = vadd.f32 %v1500_v0, %v2499_v3 }
 0x165   :  { %v791_v10 = vpop.f32.mrf.mxu0  ;;  %v919_v11 = vpop.f32.mrf.mxu1  ;;  %v1574_v3 = vmul.f32 %v2515_v19, %v2515_v19  ;;  %v1577_v47 = vmul.f32 %v2541_v50, %v2541_v50  ;;  %v1578_v0 = vmul.f32 %v2552_v2, %v2552_v2 }
 0x166   :  { %2104 = vst [vmem:[#allocation8 + $0x40] sm:$0xff] %v1980_v17   ;;  %2120 = vst [vmem:[#allocation8 + $0xc0] sm:$0xff] %v2060_v21   ;;  %v1634_v9 = vadd.f32 %v1633_v1, %v1571_v51  ;;  %v1502_v12 = vadd.f32 %v1501_v57, %v2503_v7  ;;  %v1575_v7 = vmul.f32 %v2523_v29, %v2523_v29 }
 0x167   :  { %v2566_v16 = vpop.f32.mrf.mxu0  ;;  %v2568_v23 = vpop.f32.mrf.mxu1 }
 0x168   :  { %v1635_v31 = vadd.f32 %v1634_v9, %v1572_v6  ;;  %v1503_v26 = vadd.f32 %v1502_v12, %v2511_v13 }
 0x169   :  { %v796_v33 = vpop.f32.mrf.mxu0  ;;  %v924_v34 = vpop.f32.mrf.mxu1 }
 0x16a   :  { %v1636_v33 = vadd.f32 %v1635_v31, %v1573_v27  ;;  %v1504_v39 = vadd.f32 %v1503_v26, %v2515_v19 }
 0x16b   :  { %v2576_v43 = vpop.f32.mrf.mxu0  ;;  %v2578_v44 = vpop.f32.mrf.mxu1 }
 0x16c   :  { %v1985_v41 = vpack.c.bf16 %v2576_v43, %v2566_v16  ;;  %v2065_v46 = vpack.c.bf16 %v2578_v44, %v2568_v23  ;;  %v1637_v40 = vadd.f32 %v1636_v33, %v1574_v3  ;;  %v1505_v49 = vadd.f32 %v1504_v39, %v2523_v29 }
 0x16d   :  { %v799_v54 = vpop.f32.mrf.mxu0  ;;  %v927_v55 = vpop.f32.mrf.mxu1  ;;  %v1580_v12 = vmul.f32 %v2576_v43, %v2576_v43 }
 0x16e   :  { %2105 = vst [vmem:[#allocation8 + $0x48] sm:$0xff] %v1985_v41   ;;  %2121 = vst [vmem:[#allocation8 + $0xc8] sm:$0xff] %v2065_v46   ;;  %v1638_v13 = vadd.f32 %v1637_v40, %v1575_v7  ;;  %v1506_v56 = vadd.f32 %v1505_v49, %v2527_v35 }
 0x16f   :  { %v2590_v60 = vpop.f32.mrf.mxu0  ;;  %v2592_v63 = vpop.f32.mrf.mxu1 }
 0x170   :  { %v1639_v51 = vadd.f32 %v1638_v13, %v1576_v45  ;;  %v1507_v29 = vadd.f32 %v1506_v56, %v2541_v50  ;;  %v1581_v3 = vmul.f32 %v2590_v60, %v2590_v60 }
 0x171   :  { %v804_v17 = vpop.f32.mrf.mxu0  ;;  %v932_v21 = vpop.f32.mrf.mxu1 }
 0x172   :  { %v1640_v17 = vadd.f32 %v1639_v51, %v1577_v47  ;;  %v1579_v21 = vmul.f32 %v2566_v16, %v2566_v16  ;;  %v1508_v9 = vadd.f32 %v1507_v29, %v2552_v2 }
 0x173   :  { %v2600_v10 = vpop.f32.mrf.mxu0  ;;  %v2602_v11 = vpop.f32.mrf.mxu1 }
 0x174   :  { %v1990_v61 = vpack.c.bf16 %v2600_v10, %v2590_v60  ;;  %v2070_v15 = vpack.c.bf16 %v2602_v11, %v2592_v63  ;;  %v1641_v27 = vadd.f32 %v1640_v17, %v1578_v0  ;;  %v1509_v31 = vadd.f32 %v1508_v9, %v2566_v16 }
 0x175   :  { %v807_v24 = vpop.f32.mrf.mxu0  ;;  %v935_v25 = vpop.f32.mrf.mxu1  ;;  %v1582_v39 = vmul.f32 %v2600_v10, %v2600_v10 }
 0x176   :  { %2106 = vst [vmem:[#allocation8 + $0x50] sm:$0xff] %v1990_v61   ;;  %2122 = vst [vmem:[#allocation8 + $0xd0] sm:$0xff] %v2070_v15   ;;  %v1642_v50 = vadd.f32 %v1641_v27, %v1579_v21  ;;  %v1510_v26 = vadd.f32 %v1509_v31, %v2576_v43 }
 0x177   :  { %v810_v34 = vpop.f32.mrf.mxu0  ;;  %v2614_v37 = vpop.f32.mrf.mxu1 }
 0x178   :  { %v1643_v7 = vadd.f32 %v1642_v50, %v1580_v12  ;;  %v1511_v16 = vadd.f32 %v1510_v26, %v2590_v60 }
 0x179   :  { %v812_v41 = vpop.f32.mrf.mxu0  ;;  %v940_v46 = vpop.f32.mrf.mxu1 }
 0x17a   :  { %v1644_v41 = vadd.f32 %v1643_v7, %v1581_v3  ;;  %v1583_v46 = vmul.f32 %v810_v34, %v810_v34  ;;  %v1512_v43 = vadd.f32 %v1511_v16, %v2600_v10 }
 0x17b   :  { %v813_v54 = vpop.f32.mrf.mxu0  ;;  %v2622_v55 = vpop.f32.mrf.mxu1 }
 0x17c   :  { %v1995_v59 = vpack.c.bf16 %v813_v54, %v810_v34  ;;  %v2075_v19 = vpack.c.bf16 %v2622_v55, %v2614_v37  ;;  %v1645_v47 = vadd.f32 %v1644_v41, %v1582_v39  ;;  %v1584_v56 = vmul.f32 %v813_v54, %v813_v54 }
 0x17d   :  { %v815_v1 = vpop.f32.mrf.mxu0  ;;  %v943_v6 = vpop.f32.mrf.mxu1  ;;  %v1513_v51 = vadd.f32 %v1512_v43, %v810_v34 }
 0x17e   :  { %2107 = vst [vmem:[#allocation8 + $0x58] sm:$0xff] %v1995_v59   ;;  %2123 = vst [vmem:[#allocation8 + $0xd8] sm:$0xff] %v2075_v19   ;;  %v1646_v0 = vadd.f32 %v1645_v47, %v1583_v46 }
 0x17f   :  { %v818_v57 = vpop.f32.mrf.mxu0  ;;  %v2632_v35 = vpop.f32.mrf.mxu1  ;;  %v1514_v60 = vadd.f32 %v1513_v51, %v813_v54 }
 0x180   :  { %v1585_v1 = vmul.f32 %v818_v57, %v818_v57  ;;  %v1647_v9 = vadd.f32 %v1646_v0, %v1584_v56 }
 0x181   :  { %v820_v61 = vpop.f32.mrf.mxu0  ;;  %v948_v15 = vpop.f32.mrf.mxu1  ;;  %v1515_v10 = vadd.f32 %v1514_v60, %v818_v57 }
 0x182   :  { %v1648_v15 = vadd.f32 %v1647_v9, %v1585_v1 }
 0x183   :  { %v821_v24 = vpop.f32.mrf.mxu0  ;;  %v2640_v25 = vpop.f32.mrf.mxu1 }
 0x184   :  { %v2000_v33 = vpack.c.bf16 %v821_v24, %v818_v57  ;;  %v2080_v2 = vpack.c.bf16 %v2640_v25, %v2632_v35  ;;  %v1586_v27 = vmul.f32 %v821_v24, %v821_v24  ;;  %v1516_v3 = vadd.f32 %v1515_v10, %v821_v24 }
 0x185   :  { %v823_v40 = vpop.f32.mrf.mxu0  ;;  %v951_v45 = vpop.f32.mrf.mxu1 }
 0x186   :  { %2108 = vst [vmem:[#allocation8 + $0x60] sm:$0xff] %v2000_v33   ;;  %2124 = vst [vmem:[#allocation8 + $0xe0] sm:$0xff] %v2080_v2   ;;  %v1649_v26 = vadd.f32 %v1648_v15, %v1586_v27 }
 0x187   :  { %v826_v49 = vpop.f32.mrf.mxu0  ;;  %v2648_v13 = vpop.f32.mrf.mxu1 }
 0x188   :  { %v1587_v31 = vmul.f32 %v826_v49, %v826_v49  ;;  %v1517_v7 = vadd.f32 %v1516_v3, %v826_v49 }
 0x189   :  { %v828_v59 = vpop.f32.mrf.mxu0  ;;  %v956_v19 = vpop.f32.mrf.mxu1 }
 0x18a   :  { %v1650_v39 = vadd.f32 %v1649_v26, %v1587_v31  ;;  %v1593_v26 = vmul.f32 %v2441_v18, %v2441_v18 }
 0x18b   :  { %v829_v6 = vpop.f32.mrf.mxu0  ;;  %v2651_v29 = vpop.f32.mrf.mxu1 }
 0x18c   :  { %v2005_v17 = vpack.c.bf16 %v829_v6, %v826_v49  ;;  %v2085_v21 = vpack.c.bf16 %v2651_v29, %v2648_v13  ;;  %v1588_v33 = vmul.f32 %v829_v6, %v829_v6  ;;  %v1518_v41 = vadd.f32 %v1517_v7, %v829_v6 }
 0x18d   :  { %v831_v12 = vpop.f32.mrf.mxu0  ;;  %v959_v61 = vpop.f32.mrf.mxu1 }
 0x18e   :  { %2109 = vst [vmem:[#allocation8 + $0x68] sm:$0xff] %v2005_v17   ;;  %2125 = vst [vmem:[#allocation8 + $0xe8] sm:$0xff] %v2085_v21   ;;  %v1651_v43 = vadd.f32 %v1650_v39, %v1588_v33 }
 0x18f   :  { %v834_v34 = vpop.f32.mrf.mxu0  ;;  %v2655_v50 = vpop.f32.mrf.mxu1 }
 0x190   :  { %v1589_v40 = vmul.f32 %v834_v34, %v834_v34  ;;  %v1519_v24 = vadd.f32 %v1518_v41, %v834_v34 }
 0x191   :  { %v836_v54 = vpop.f32.mrf.mxu0  ;;  %v964_v2 = vpop.f32.mrf.mxu1 }
 0x192   :  { %v1652_v19 = vadd.f32 %v1651_v43, %v1589_v40 }
 0x193   :  { %v837_v45 = vpop.f32.mrf.mxu0  ;;  %v2657_v16 = vpop.f32.mrf.mxu1 }
 0x194   :  { %v2010_v57 = vpack.c.bf16 %v837_v45, %v834_v34  ;;  %v2090_v46 = vpack.c.bf16 %v2657_v16, %v2655_v50  ;;  %v1590_v47 = vmul.f32 %v837_v45, %v837_v45  ;;  %v1520_v0 = vadd.f32 %v1519_v24, %v837_v45 }
 0x195   :  { %v839_v56 = vpop.f32.mrf.mxu0  ;;  %v967_v59 = vpop.f32.mrf.mxu1 }
 0x196   :  { %2110 = vst [vmem:[#allocation8 + $0x70] sm:$0xff] %v2010_v57   ;;  %2126 = vst [vmem:[#allocation8 + $0xf0] sm:$0xff] %v2090_v46   ;;  %v1653_v60 = vadd.f32 %v1652_v19, %v1590_v47 }
 0x197   :  { %v842_v51 = vpop.f32.mrf.mxu0  ;;  %v2661_v49 = vpop.f32.mrf.mxu1 }
 0x198   :  { %v1591_v1 = vmul.f32 %v842_v51, %v842_v51  ;;  %v1521_v21 = vadd.f32 %v1520_v0, %v842_v51 }
 0x199   :  { %v844_v17 = vpop.f32.mrf.mxu0  ;;  %v972_v6 = vpop.f32.mrf.mxu1 }
 0x19a   :  { %v1654_v9 = vadd.f32 %v1653_v60, %v1591_v1 }
 0x19b   :  { %v845_v27 = vpop.f32.mrf.mxu0  ;;  %v2663_v12 = vpop.f32.mrf.mxu1 }
 0x19c   :  { %v2015_v61 = vpack.c.bf16 %v845_v27, %v842_v51  ;;  %v1522_v10 = vadd.f32 %v1521_v21, %v845_v27  ;;  %v1592_v15 = vmul.f32 %v845_v27, %v845_v27  ;;  %v2095_v31 = vpack.c.bf16 %v2663_v12, %v2661_v49 }
 0x19d   :  { %v847_v34 = vpop.f32.mrf.mxu0  ;;  %v975_v3 = vpop.f32.mrf.mxu1 }
 0x19e   :  { %2111 = vst [vmem:[#allocation8 + $0x78] sm:$0xff] %v2015_v61   ;;  %v1523_v33 = vadd.f32 %v1522_v10, %v2441_v18  ;;  %v1655_v54 = vadd.f32 %v1654_v9, %v1592_v15  ;;  %2127 = vst [vmem:[#allocation8 + $0xf8] sm:$0xff] %v2095_v31  }
 0x19f   :  { %2332 = shalt.err (!%p2329_p0)
}
 0x1a0   :  { %1708 = dma.vmem_to_hbm [thread:$0]  %s1703_s1, 4096, %s2774_s2, [#allocation5], %s2373_s22, %s2373_s22, %s2374_s23   ;;  %v1594_v2 = vmul.f32 %v2445_v22, %v2445_v22  ;;  %v1524_v18 = vadd.f32 %v1523_v33, %v2445_v22  ;;  %v1656_v7 = vadd.f32 %v1655_v54, %v1593_v26  ;;  %v1595_v39 = vmul.f32 %v2453_v28, %v2453_v28 }
 0x1a1   :  { %v1596_v41 = vmul.f32 %v2457_v32, %v2457_v32  ;;  %v1597_v43 = vmul.f32 %v2465_v38, %v2465_v38  ;;  %v1598_v22 = vmul.f32 %v2469_v42, %v2469_v42  ;;  %s2377_s2 = smov [#allocation9]   ;;  %vm1694_vm0 = vcmask 1040384  }
 0x1a2   :  { %v1525_v40 = vadd.f32 %v1524_v18, %v2453_v28  ;;  %v1657_v45 = vadd.f32 %v1656_v7, %v1594_v2  ;;  %v1599_v28 = vmul.f32 %v2477_v48, %v2477_v48  ;;  %s1715_s29 = sshll.u32 %s2377_s2, 4  ;;  %s1716_s29 = int_to_ptr.vmem [resolvable:$true] %s1715_s29 }
 0x1a3   :  { %s2341_s30 = scalar_lea.vmem %s1716_s29, 32  ;;  %p2346_p2 = scmp.lt.s32.totalorder %s1716_s29, %s1716_s29 }
 0x1a4   :  { %v1526_v57 = vadd.f32 %v1525_v40, %v2457_v32  ;;  %v1658_v46 = vadd.f32 %v1657_v45, %v1595_v39  ;;  %v1600_v32 = vmul.f32 %v2481_v52, %v2481_v52  ;;  %v1610_v39 = vmul.f32 %v2554_v5, %v2554_v5  ;;  %p2342_p1 = scmp.ne.s32.totalorder %s1716_s29, %s2341_s30  ;;  %p2347_p3 = scmp.lt.s32.totalorder %s2341_s30, %s2341_s30 }
 0x1a6   :  { %v1527_v47 = vadd.f32 %v1526_v57, %v2465_v38  ;;  %v1659_v56 = vadd.f32 %v1658_v46, %v1596_v41  ;;  %v1601_v38 = vmul.f32 %v2489_v58, %v2489_v58  ;;  %v1611_v41 = vmul.f32 %v2568_v23, %v2568_v23  ;;  %p2348_p4 = por %p2347_p3, %p2346_p2 }
 0x1a7   :  { %v1612_v46 = vmul.f32 %v2578_v44, %v2578_v44 }
 0x1a8   :  { %v1528_v59 = vadd.f32 %v1527_v47, %v2469_v42  ;;  %v1660_v24 = vadd.f32 %v1659_v56, %v1597_v43  ;;  %v1602_v42 = vmul.f32 %v2493_v62, %v2493_v62  ;;  %v1613_v47 = vmul.f32 %v2592_v63, %v2592_v63  ;;  %p2349_p5 = pnand %p2348_p4, %p2342_p1 }
 0x1aa   :  { %v1529_v19 = vadd.f32 %v1528_v59, %v2477_v48  ;;  %v1661_v51 = vadd.f32 %v1660_v24, %v1598_v22  ;;  %v1603_v48 = vmul.f32 %v2501_v4, %v2501_v4  ;;  %v1614_v22 = vmul.f32 %v2602_v11, %v2602_v11 }
 0x1ab   :  { %v1615_v24 = vmul.f32 %v2614_v37, %v2614_v37 }
 0x1ac   :  { %v1530_v0 = vadd.f32 %v1529_v19, %v2481_v52  ;;  %v1662_v1 = vadd.f32 %v1661_v51, %v1599_v28  ;;  %v1604_v52 = vmul.f32 %v2505_v8, %v2505_v8  ;;  %v1616_v19 = vmul.f32 %v2622_v55, %v2622_v55 }
 0x1ae   :  { %v1663_v60 = vadd.f32 %v1662_v1, %v1600_v32  ;;  %v1531_v17 = vadd.f32 %v1530_v0, %v2489_v58  ;;  %v1605_v58 = vmul.f32 %v2513_v14, %v2513_v14  ;;  %v1617_v32 = vmul.f32 %v2632_v35, %v2632_v35 }
 0x1af   :  { %v1618_v1 = vmul.f32 %v2640_v25, %v2640_v25 }
 0x1b0   :  { %v1532_v6 = vadd.f32 %v1531_v17, %v2493_v62  ;;  %v1664_v21 = vadd.f32 %v1663_v60, %v1601_v38  ;;  %v1606_v62 = vmul.f32 %v2517_v20, %v2517_v20  ;;  %v1619_v60 = vmul.f32 %v2648_v13, %v2648_v13 }
 0x1b2   :  { %v1533_v9 = vadd.f32 %v1532_v6, %v2501_v4  ;;  %v1665_v27 = vadd.f32 %v1664_v21, %v1602_v42  ;;  %v1607_v4 = vmul.f32 %v2525_v30, %v2525_v30  ;;  %v1620_v42 = vmul.f32 %v2651_v29, %v2651_v29 }
 0x1b3   :  { %v1621_v21 = vmul.f32 %v2655_v50, %v2655_v50 }
 0x1b4   :  { %v1534_v61 = vadd.f32 %v1533_v9, %v2505_v8  ;;  %v1666_v10 = vadd.f32 %v1665_v27, %v1603_v48  ;;  %v1608_v8 = vmul.f32 %v2529_v36, %v2529_v36  ;;  %v1622_v9 = vmul.f32 %v2657_v16, %v2657_v16 }
 0x1b6   :  { %v1535_v15 = vadd.f32 %v1534_v61, %v2513_v14  ;;  %v1667_v31 = vadd.f32 %v1666_v10, %v1604_v52  ;;  %v1609_v14 = vmul.f32 %v2543_v53, %v2543_v53  ;;  %v1623_v52 = vmul.f32 %v2661_v49, %v2661_v49 }
 0x1b7   :  { %v1624_v10 = vmul.f32 %v2663_v12, %v2663_v12 }
 0x1b8   :  { %v1536_v34 = vadd.f32 %v1535_v15, %v2517_v20  ;;  %v1668_v3 = vadd.f32 %v1667_v31, %v1605_v58 }
 0x1ba   :  { %v1537_v26 = vadd.f32 %v1536_v34, %v2525_v30  ;;  %v1669_v33 = vadd.f32 %v1668_v3, %v1606_v62 }
 0x1bc   :  { %v1538_v54 = vadd.f32 %v1537_v26, %v2529_v36  ;;  %v1670_v2 = vadd.f32 %v1669_v33, %v1607_v4 }
 0x1be   :  { %v1539_v18 = vadd.f32 %v1538_v54, %v2543_v53  ;;  %v1671_v7 = vadd.f32 %v1670_v2, %v1608_v8 }
 0x1c0   :  { %v1540_v20 = vadd.f32 %v1539_v18, %v2554_v5  ;;  %v1672_v40 = vadd.f32 %v1671_v7, %v1609_v14 }
 0x1c2   :  { %v1673_v30 = vadd.f32 %v1672_v40, %v1610_v39  ;;  %v1541_v45 = vadd.f32 %v1540_v20, %v2568_v23 }
 0x1c4   :  { %v1674_v36 = vadd.f32 %v1673_v30, %v1611_v41  ;;  %v1542_v57 = vadd.f32 %v1541_v45, %v2578_v44 }
 0x1c6   :  { %v1675_v53 = vadd.f32 %v1674_v36, %v1612_v46  ;;  %v1543_v43 = vadd.f32 %v1542_v57, %v2592_v63 }
 0x1c8   :  { %v1676_v5 = vadd.f32 %v1675_v53, %v1613_v47  ;;  %v1544_v56 = vadd.f32 %v1543_v43, %v2602_v11 }
 0x1ca   :  { %v1677_v59 = vadd.f32 %v1676_v5, %v1614_v22  ;;  %v1545_v23 = vadd.f32 %v1544_v56, %v2614_v37 }
 0x1cc   :  { %v1678_v28 = vadd.f32 %v1677_v59, %v1615_v24  ;;  %v1546_v44 = vadd.f32 %v1545_v23, %v2622_v55 }
 0x1ce   :  { %v1679_v51 = vadd.f32 %v1678_v28, %v1616_v19  ;;  %v1547_v63 = vadd.f32 %v1546_v44, %v2632_v35 }
 0x1d0   :  { %v1680_v0 = vadd.f32 %v1679_v51, %v1617_v32  ;;  %v1548_v11 = vadd.f32 %v1547_v63, %v2640_v25 }
 0x1d2   :  { %v1681_v38 = vadd.f32 %v1680_v0, %v1618_v1  ;;  %v1549_v37 = vadd.f32 %v1548_v11, %v2648_v13 }
 0x1d4   :  { %v1682_v17 = vadd.f32 %v1681_v38, %v1619_v60  ;;  %v1550_v55 = vadd.f32 %v1549_v37, %v2651_v29 }
 0x1d6   :  { %v1683_v6 = vadd.f32 %v1682_v17, %v1620_v42  ;;  %v1551_v35 = vadd.f32 %v1550_v55, %v2655_v50 }
 0x1d8   :  { %v1684_v48 = vadd.f32 %v1683_v6, %v1621_v21  ;;  %v1552_v25 = vadd.f32 %v1551_v35, %v2657_v16 }
 0x1da   :  { %v1685_v27 = vadd.f32 %v1684_v48, %v1622_v9  ;;  %v1553_v13 = vadd.f32 %v1552_v25, %v2661_v49 }
 0x1dc   :  { %v1686_v61 = vadd.f32 %v1685_v27, %v1623_v52  ;;  %v1554_v29 = vadd.f32 %v1553_v13, %v2663_v12 }
 0x1de   :  { %v1555_v58 = vrot.slane %v1554_v29, 4  ;;  %v1687_v50 = vadd.f32 %v1686_v61, %v1624_v10 }
 0x1e0   :  { %v1556_v15 = vadd.f32 %v1555_v58, %v1554_v29  ;;  %v1688_v31 = vrot.slane %v1687_v50, 4 }
 0x1e2   :  { %v1557_v62 = vrot.slane %v1556_v15, 2  ;;  %v1689_v34 = vadd.f32 %v1688_v31, %v1687_v50 }
 0x1e4   :  { %v1558_v3 = vadd.f32 %v1557_v62, %v1556_v15  ;;  %v1690_v16 = vrot.slane %v1689_v34, 2 }
 0x1e6   :  { %v1559_v4 = vrot.slane %v1558_v3, 1  ;;  %v1691_v26 = vadd.f32 %v1690_v16, %v1689_v34 }
 0x1e8   :  { %v1692_v33 = vrot.slane %v1691_v26, 1  ;;  %v1560_v49 = vadd.f32 %v1559_v4, %v1558_v3 }
 0x1ea   :  { %v1693_v8 = vadd.f32 %v1692_v33, %v1691_v26 }
 0x1ec   :  { %v1695_v54 = vsel %vm1694_vm0, %v1560_v49, %v1693_v8 }
 0x1ed   :  { %1696 = vst [vmem:[#allocation9] sm:$0x3] %v1695_v54 }
 0x1ee   :  { %2352 = shalt.err (!%p2349_p5)
}
 0x1ef   :  { %1718 = dma.vmem_to_hbm [thread:$0]  %s1716_s29, 32, %s2775_s3, [#allocation10]  }
 0x1f0   :  { %2365 = dma.done.wait [#allocation5], 4096  }
 0x1f1   :  { %2366 = vsyncadd [#allocation5], 4294963200 }
 0x1f2   :  { %2367 = dma.done.wait [#allocation10], 32  }
 0x1f3   :  { %2368 = vsyncadd [#allocation10], 4294967264 }
 0x1f4   :  { %1725 = vsyncpa [#allocation4], 1 }
 0x1f5   :  { %1726 = vsyncpa [#allocation7], 1 }
 0x1f6   :  { %1727 = vsyncpa [#allocation5], 1 }
 0x1f7   :  { %1728 = vsyncpa [#allocation10], 1 }

</bundles_post_ra>
